<compile_context>
chip_gen: v5e
topology: v5e:2x2
jax: 0.10.0
libtpu: 0.0.40
codegen_flags: <defaults>
</compile_context>

<pallas_src>
import functools

import jax
import jax.numpy as jnp
from jax.experimental import pallas as pl
from jax.experimental.pallas import tpu as pltpu


def _round_up(x, m):
    return ((x + m - 1) // m) * m


def _vmem_capacity_bytes():
    """Physical per-core VMEM (128 MiB on v5e/v6e, 64 MiB per TC on v7x)."""
    try:
        return int(pltpu.get_tpu_info().vmem_capacity_bytes)
    except Exception:
        return 64 * 1024 * 1024  # conservative fallback (v7x per-TC VMEM)


def _bf16_vpu_available():
    """v6e / v7x have a bf16 VPU + EUP; v5e and older do not."""
    try:
        kind = jax.devices()[0].device_kind.lower()
    except Exception:
        return False
    return ("v6" in kind) or ("v7" in kind)


# Stream up to this much logits data from HBM per grid step: amortizes the
# ~0.35 us per-step overhead at 0.8/1.4/3.2 TB/s (v5e/v6e/v7x) HBM without
# ballooning VMEM for large C.
_TARGET_HBM_BYTES_PER_STEP = 8 * 1024 * 1024


def _pick_tile_n(n, c, itemsize, align, vmem_budget_bytes):
    """Byte-driven, dtype- and lane-padding-aware tile sizing."""
    padded_c = _round_up(c, 128)  # VMEM lane padding of the last dim
    per_row_vmem = (
        2 * padded_c * itemsize   # double-buffered logits tile (native dtype)
        + 2 * 128 * 4             # double-buffered (r, 1) int32 target column
        + 4 * padded_c * 4        # ~4 live f32-equivalent (r, C) temporaries
    )
    rows_vmem = vmem_budget_bytes // per_row_vmem
    rows_hbm = _TARGET_HBM_BYTES_PER_STEP // max(1, c * itemsize)
    rows = min(rows_vmem, rows_hbm, _round_up(n, align))
    return max(align, (rows // align) * align)


def _focal_kernel(*refs, gamma, alpha_mode, alpha_value, ignore_index,
                  n_rows, tile_n, weight_denom, compute_dtype):
    if alpha_mode == "vector":
        a_ref, x_ref, t_ref, out_ref = refs
    else:
        x_ref, t_ref, out_ref = refs

    i = pl.program_id(0)

    x = x_ref[...]                               # (TN, C) native dtype
    if x.dtype != compute_dtype:
        # f32 inputs (and any input on v5e, which has no bf16 VPU/EUP) are
        # computed in f32; bf16 inputs on v6e/v7x stay bf16 for the (TN, C)
        # elementwise pipeline.
        x = x.astype(compute_dtype)
    t = t_ref[...]                               # (TN, 1) int32

    # Numerically-stable log-softmax pieces.  All reductions here are per-row
    # (axis=-1) so stale rows of the ragged last tile stay contained until the
    # validity mask below.
    m = jnp.max(x, axis=-1, keepdims=True)
    z = x - m                                    # (TN, C) compute_dtype
    e = jnp.exp(z)                               # EUP (bf16 on v6e/v7x)
    sum_e = jnp.sum(e.astype(jnp.float32), axis=-1, keepdims=True)
    log_z = jnp.log(sum_e)                       # (TN, 1) f32

    # Gather z at the target class via a one-hot compare.  Only one nonzero
    # per row, so the low-precision sum is exact.
    col = jax.lax.broadcasted_iota(jnp.int32, x.shape, 1)
    onehot = col == t                            # (TN, C) bool
    zt = jnp.sum(jnp.where(onehot, z, 0), axis=-1,
                 keepdims=True).astype(jnp.float32)
    logpt = zt - log_z                           # (TN, 1) f32, <= 0
    pt = jnp.exp(logpt)                          # (TN, 1) f32

    # (1 - pt) ** gamma, specialized on the compile-time gamma.
    g = float(gamma)
    if g == 0.0:
        mod = jnp.ones_like(pt)
    elif g == float(int(g)) and 0 < int(g) <= 4:
        one_m_pt = 1.0 - pt
        mod = one_m_pt
        for _ in range(int(g) - 1):
            mod = mod * one_m_pt
    else:
        # General (non-integer) gamma: single pow on the (TN, 1) column only.
        mod = jnp.power(jnp.maximum(1.0 - pt, 0.0), g)

    focal = -mod * logpt                         # (TN, 1) f32

    # Alpha weighting.
    if alpha_mode == "vector":
        aw = a_ref[...].astype(jnp.float32)      # (1, C)
        w = jnp.sum(jnp.where(onehot, aw, 0.0), axis=-1, keepdims=True)
    elif alpha_mode == "float":
        a = jnp.float32(alpha_value)
        w = jnp.where(t > 0, jnp.float32(1.0) - a, a)
    else:
        w = jnp.ones_like(focal)

    # Validity: not ignore_index AND inside the real N (ragged last tile is
    # masked here instead of being padded on the host).
    row = jax.lax.broadcasted_iota(jnp.int32, t.shape, 0) + i * tile_n
    valid = (t != ignore_index) & (row < n_rows)

    loss = jnp.where(valid, focal * w, 0.0)
    den_vals = w if weight_denom else jnp.ones_like(focal)
    den = jnp.where(valid, den_vals, 0.0)

    loss_sum = jnp.sum(loss)
    den_sum = jnp.sum(den)

    # Lane-dense partial output: [tile, 0, 0] = loss sum, [tile, 0, 1] = denom.
    sub = jax.lax.broadcasted_iota(jnp.int32, out_ref.shape, 1)
    lane = jax.lax.broadcasted_iota(jnp.int32, out_ref.shape, 2)
    out_ref[...] = jnp.where(
        (sub == 0) & (lane == 0), loss_sum,
        jnp.where((sub == 0) & (lane == 1), den_sum, 0.0))


def focal_loss(logits, target, *, alpha=None, gamma=2.0, reduction="mean",
               ignore_index=-100, tile_n=None, compute_in_bf16=None):
    """Pallas TPU implementation of FocalLoss.forward.

    logits: (N, C) float array (f32 or bf16), target: (N,) integer array.
    alpha: None, a float, or a length-C sequence of per-class weights.
    Supports reduction in {"mean", "sum"}.
    """
    if logits.ndim != 2 or target.ndim != 1:
        raise ValueError(
            f"input tensors should be of shape (N, C) and (N,). "
            f"Got: {logits.shape} and {target.shape}")
    if logits.shape[0] != target.shape[0]:
        raise ValueError(
            f"First dimension of inputs and targets should be same shape. "
            f"Got: {logits.shape} and {target.shape}")
    if reduction == "none":
        # TODO(synk): reduction='none' returns the per-row losses of only the
        # non-ignored rows (a dynamically-sized vector); not representable
        # with static shapes here.
        raise NotImplementedError("reduction='none' is not supported")
    if reduction not in ("mean", "sum"):
        raise NotImplementedError(f"Invalid reduction mode: {reduction}")

    N, C = logits.shape
    itemsize = jnp.dtype(logits.dtype).itemsize
    align = {4: 8, 2: 16, 1: 32}.get(itemsize, 8)

    # bf16 math only when the input is already bf16 AND the chip has a bf16
    # VPU/EUP (v6e/v7x); everything else computes in f32.
    if compute_in_bf16 is None:
        compute_in_bf16 = (logits.dtype == jnp.bfloat16) and _bf16_vpu_available()
    compute_dtype = (jnp.bfloat16
                     if (compute_in_bf16 and logits.dtype == jnp.bfloat16)
                     else jnp.float32)

    # Generation-gated VMEM limit: ~96 MiB on v5e/v6e (128 MiB physical),
    # ~48 MiB on v7x (64 MiB per-TC physical); never below the 32 MiB default.
    vmem_cap = _vmem_capacity_bytes()
    vmem_limit = int(min(max((vmem_cap * 3) // 4, 32 * 1024 * 1024),
                         96 * 1024 * 1024))
    tile_budget = (vmem_limit * 4) // 5   # leave headroom for output/misc

    if tile_n is None:
        tile_n = _pick_tile_n(N, C, itemsize, align, tile_budget)
        # Guarantee >= 2 grid steps when N allows, so the "parallel" grid axis
        # can actually be split across v7x's two TensorCores.
        if tile_n >= N and N >= 2 * align:
            tile_n = max(align, _round_up(-(-N // 2), align))
    else:
        tile_n = max(align, _round_up(int(tile_n), align))
    num_tiles = -(-N // tile_n)

    # TODO(synk): for vocab-scale C (>=16-32k classes) a trailing 'arbitrary'
    # C axis with online-softmax accumulators would keep tiles ~MiB-sized;
    # TODO(synk): a lane-dense (1, tile_n) target block + in-kernel relayout
    # would shrink the padded target-column VMEM/DMA further.
    t = jnp.asarray(target, jnp.int32).reshape(N, 1)

    alpha_mode = "none"
    alpha_value = 0.0
    inputs = []
    in_specs = []
    if alpha is None:
        pass
    elif isinstance(alpha, float):
        alpha_mode = "float"
        alpha_value = float(alpha)
    else:
        alpha_mode = "vector"
        a = jnp.asarray(alpha, jnp.float32).reshape(1, C)
        inputs.append(a)
        in_specs.append(pl.BlockSpec((1, C), lambda i: (0, 0)))

    inputs += [logits, t]
    in_specs += [
        pl.BlockSpec((tile_n, C), lambda i: (i, 0)),
        pl.BlockSpec((tile_n, 1), lambda i: (i, 0)),
    ]

    kernel = functools.partial(
        _focal_kernel,
        gamma=float(gamma),
        alpha_mode=alpha_mode,
        alpha_value=alpha_value,
        ignore_index=int(ignore_index),
        n_rows=N,
        tile_n=tile_n,
        weight_denom=(alpha_mode == "vector"),
        compute_dtype=compute_dtype)

    # Advisory cost estimate so XLA can overlap this memory-bound kernel with
    # neighboring ops in a training step.
    bytes_accessed = (N * C * itemsize + N * 4 + num_tiles * 8 * 128 * 4
                      + (C * 4 if alpha_mode == "vector" else 0))
    cost = pl.CostEstimate(flops=int(6 * N * C + 20 * N),
                           transcendentals=int(N * C + 4 * N),
                           bytes_accessed=int(bytes_accessed))

    out = pl.pallas_call(
        kernel,
        out_shape=jax.ShapeDtypeStruct((num_tiles, 8, 128), jnp.float32),
        grid_spec=pltpu.PrefetchScalarGridSpec(
            num_scalar_prefetch=0,
            grid=(num_tiles,),
            in_specs=in_specs,
            out_specs=pl.BlockSpec((1, 8, 128), lambda i: (i, 0, 0)),
        ),
        compiler_params=pltpu.CompilerParams(
            dimension_semantics=("parallel",),
            vmem_limit_bytes=vmem_limit),
        cost_estimate=cost,
    )(*inputs)

    # Tiny final reduction over per-tile partials in plain JAX.
    # Note: like the PyTorch module, 'mean' with every row ignored yields
    # NaN/Inf (denominator 0).
    loss_total = jnp.sum(out[:, 0, 0])
    den_total = jnp.sum(out[:, 0, 1])
    if reduction == "mean":
        return loss_total / den_total
    return loss_total


def _focal_loss_ref(logits, target, *, alpha=None, gamma=2.0,
                    reduction="mean", ignore_index=-100):
    """Pure-JAX reference mirroring the PyTorch module."""
    x = logits.astype(jnp.float32)
    target = target.astype(jnp.int32)
    valid = target != ignore_index
    t_safe = jnp.where(valid, target, 0)

    logp = jax.nn.log_softmax(x, axis=1)
    logpt = jnp.take_along_axis(logp, t_safe[:, None], axis=1)[:, 0]
    pt = jnp.exp(logpt)
    focal = -((1.0 - pt) ** float(gamma)) * logpt

    if alpha is None:
        w = jnp.ones_like(focal)
        weight_denom = False
    elif isinstance(alpha, float):
        w = jnp.where(t_safe > 0, 1.0 - alpha, alpha).astype(jnp.float32)
        weight_denom = False
    else:
        av = jnp.asarray(alpha, jnp.float32)
        w = av[t_safe]
        weight_denom = True

    tmp = jnp.where(valid, focal * w, 0.0)
    if reduction == "sum":
        return jnp.sum(tmp)
    den_vals = w if weight_denom else jnp.ones_like(w)
    den = jnp.sum(jnp.where(valid, den_vals, 0.0))
    return jnp.sum(tmp) / den


if __name__ == "__main__":
    key = jax.random.PRNGKey(0)
    k1, k2, k3, k4 = jax.random.split(key, 4)

    N, C = 19, 7
    logits = jax.random.normal(k1, (N, C), dtype=jnp.float32)
    target = jax.random.randint(k2, (N,), 0, C, dtype=jnp.int32)
    # exercise the ignore_index mask on a couple of rows
    target = target.at[3].set(-100)
    target = target.at[11].set(-100)

    cases = [
        dict(alpha=None, gamma=2.0, reduction="mean"),
        dict(alpha=0.25, gamma=2.0, reduction="mean"),
        dict(alpha=0.25, gamma=0.0, reduction="sum"),
        dict(alpha=[0.1 * (c + 1) for c in range(C)], gamma=2.0,
             reduction="mean"),
        dict(alpha=None, gamma=1.5, reduction="sum"),
    ]
    for cfg in cases:
        # tile_n=8 exercises the multi-step grid + ragged last tile path;
        # tile_n=None exercises the auto-sized (>=2 tiles) path.
        for tn in (8, None):
            got = jax.block_until_ready(
                focal_loss(logits, target, tile_n=tn, **cfg))
            ref = _focal_loss_ref(logits, target, **cfg)
            assert jnp.allclose(got, ref, atol=1e-5, rtol=1e-5), \
                (cfg, tn, got, ref)

    # C > 128 (lane padding) + vector alpha + ragged multi-tile auto path.
    N2, C2 = 300, 160
    logits2 = jax.random.normal(k3, (N2, C2), dtype=jnp.float32)
    target2 = jax.random.randint(k4, (N2,), 0, C2, dtype=jnp.int32)
    target2 = target2.at[7].set(-100)
    alpha2 = [0.01 * (c % 13 + 1) for c in range(C2)]
    got = jax.block_until_ready(
        focal_loss(logits2, target2, alpha=alpha2, gamma=2.0, reduction="mean"))
    ref = _focal_loss_ref(logits2, target2, alpha=alpha2, gamma=2.0,
                          reduction="mean")
    assert jnp.allclose(got, ref, atol=1e-5, rtol=1e-5), (got, ref)

    # bf16 logits: f32-math path (tight tolerance) ...
    lb = logits.astype(jnp.bfloat16)
    got = jax.block_until_ready(
        focal_loss(lb, target, alpha=0.25, gamma=2.0, reduction="mean",
                   compute_in_bf16=False))
    ref = _focal_loss_ref(lb, target, alpha=0.25, gamma=2.0, reduction="mean")
    assert jnp.allclose(got, ref, atol=1e-4, rtol=1e-4), (got, ref)
    # ... and the auto path (bf16 math on v6e/v7x, f32 on v5e) with a
    # tolerance wide enough for bf16 exp/log-sum-exp.
    got = jax.block_until_ready(
        focal_loss(lb, target, alpha=0.25, gamma=2.0, reduction="mean"))
    assert jnp.allclose(got, ref, atol=5e-2, rtol=5e-2), (got, ref)

    print("KERNEL_OK")
</pallas_src>

<mosaic_0001>
module attributes {stable_mosaic.version = 11 : i64} {
  func.func @_focal_kernel(%arg0: i32, %arg1: memref<8x7xf32, #tpu.memory_space<vmem>>, %arg2: memref<8x1xi32, #tpu.memory_space<vmem>>, %arg3: memref<1x8x128xf32, #tpu.memory_space<vmem>>) attributes {dimension_semantics = [#tpu.dimension_semantics<parallel>], iteration_bounds = array<i64: 3>, scalar_prefetch = 0 : i64, scratch_operands = 0 : i64, tpu.core_type = #tpu.core_type<tc>, window_params = [{transform_indices = @transform_0, window_bounds = array<i64: 8, 7>}, {transform_indices = @transform_1, window_bounds = array<i64: 8, 1>}, {transform_indices = @transform_2, window_bounds = array<i64: 1, 8, 128>}]} {
    %c0 = arith.constant 0 : index
    %c0_0 = arith.constant 0 : index
    %0 = vector.load %arg1[%c0, %c0_0] : memref<8x7xf32, #tpu.memory_space<vmem>>, vector<8x7xf32>
    %c0_1 = arith.constant 0 : index
    %c0_2 = arith.constant 0 : index
    %1 = vector.load %arg2[%c0_1, %c0_2] : memref<8x1xi32, #tpu.memory_space<vmem>>, vector<8x1xi32>
    %cst = arith.constant dense<0xFF800000> : vector<8xf32>
    %2 = vector.multi_reduction <maximumf>, %0, %cst [1] : vector<8x7xf32> to vector<8xf32>
    %3 = vector.shape_cast %2 : vector<8xf32> to vector<8x1xf32>
    %4 = vector.broadcast %3 : vector<8x1xf32> to vector<8x7xf32>
    %5 = arith.subf %0, %4 : vector<8x7xf32>
    %6 = math.exp %5 : vector<8x7xf32>
    %cst_3 = arith.constant dense<0.000000e+00> : vector<8xf32>
    %7 = vector.multi_reduction <add>, %6, %cst_3 [1] : vector<8x7xf32> to vector<8xf32>
    %8 = vector.shape_cast %7 : vector<8xf32> to vector<8x1xf32>
    %9 = math.log %8 : vector<8x1xf32>
    %10 = tpu.iota {dimensions = array<i32: 1>} : vector<8x7xi32>
    %11 = vector.broadcast %1 : vector<8x1xi32> to vector<8x7xi32>
    %12 = arith.cmpi eq, %10, %11 : vector<8x7xi32>
    %c0_i32 = arith.constant 0 : i32
    %13 = arith.sitofp %c0_i32 : i32 to f32
    %14 = vector.broadcast %13 : f32 to vector<8x7xf32>
    %15 = arith.select %12, %5, %14 : vector<8x7xi1>, vector<8x7xf32>
    %cst_4 = arith.constant dense<0.000000e+00> : vector<8xf32>
    %16 = vector.multi_reduction <add>, %15, %cst_4 [1] : vector<8x7xf32> to vector<8xf32>
    %17 = vector.shape_cast %16 : vector<8xf32> to vector<8x1xf32>
    %18 = arith.subf %17, %9 : vector<8x1xf32>
    %19 = math.exp %18 : vector<8x1xf32>
    %cst_5 = arith.constant 1.000000e+00 : f32
    %20 = vector.broadcast %cst_5 : f32 to vector<8x1xf32>
    %21 = arith.subf %20, %19 : vector<8x1xf32>
    %22 = arith.mulf %21, %21 : vector<8x1xf32>
    %cst_6 = arith.constant 0.000000e+00 : f32
    %23 = vector.broadcast %cst_6 : f32 to vector<8x1xf32>
    %24 = arith.subf %23, %22 : vector<8x1xf32>
    %25 = arith.mulf %24, %18 : vector<8x1xf32>
    %cst_7 = arith.constant 1.000000e+00 : f32
    %26 = vector.broadcast %cst_7 : f32 to vector<8x1xf32>
    %27 = tpu.iota {dimensions = array<i32: 0>} : vector<8x1xi32>
    %c8_i32 = arith.constant 8 : i32
    %28 = arith.muli %arg0, %c8_i32 : i32
    %29 = vector.broadcast %28 : i32 to vector<8x1xi32>
    %30 = arith.addi %27, %29 : vector<8x1xi32>
    %c-100_i32 = arith.constant -100 : i32
    %31 = vector.broadcast %c-100_i32 : i32 to vector<8x1xi32>
    %32 = arith.cmpi ne, %1, %31 : vector<8x1xi32>
    %c19_i32 = arith.constant 19 : i32
    %33 = vector.broadcast %c19_i32 : i32 to vector<8x1xi32>
    %34 = arith.cmpi slt, %30, %33 : vector<8x1xi32>
    %35 = arith.andi %32, %34 : vector<8x1xi1>
    %36 = arith.mulf %25, %26 : vector<8x1xf32>
    %cst_8 = arith.constant 0.000000e+00 : f32
    %37 = vector.broadcast %cst_8 : f32 to vector<8x1xf32>
    %38 = arith.select %35, %36, %37 : vector<8x1xi1>, vector<8x1xf32>
    %cst_9 = arith.constant 1.000000e+00 : f32
    %39 = vector.broadcast %cst_9 : f32 to vector<8x1xf32>
    %cst_10 = arith.constant 0.000000e+00 : f32
    %40 = vector.broadcast %cst_10 : f32 to vector<8x1xf32>
    %41 = arith.select %35, %39, %40 : vector<8x1xi1>, vector<8x1xf32>
    %42 = vector.shape_cast %38 : vector<8x1xf32> to vector<1x8x1xf32>
    %cst_11 = arith.constant dense<0.000000e+00> : vector<1xf32>
    %43 = vector.multi_reduction <add>, %42, %cst_11 [1, 2] : vector<1x8x1xf32> to vector<1xf32>
    %44 = vector.shape_cast %43 : vector<1xf32> to vector<1x1x1xf32>
    %45 = vector.extract %44[0, 0, 0] : f32 from vector<1x1x1xf32>
    %46 = vector.shape_cast %41 : vector<8x1xf32> to vector<1x8x1xf32>
    %cst_12 = arith.constant dense<0.000000e+00> : vector<1xf32>
    %47 = vector.multi_reduction <add>, %46, %cst_12 [1, 2] : vector<1x8x1xf32> to vector<1xf32>
    %48 = vector.shape_cast %47 : vector<1xf32> to vector<1x1x1xf32>
    %49 = vector.extract %48[0, 0, 0] : f32 from vector<1x1x1xf32>
    %50 = tpu.iota {dimensions = array<i32: 1>} : vector<1x8x128xi32>
    %51 = tpu.iota {dimensions = array<i32: 2>} : vector<1x8x128xi32>
    %c0_i32_13 = arith.constant 0 : i32
    %52 = vector.broadcast %c0_i32_13 : i32 to vector<1x8x128xi32>
    %53 = arith.cmpi eq, %50, %52 : vector<1x8x128xi32>
    %c0_i32_14 = arith.constant 0 : i32
    %54 = vector.broadcast %c0_i32_14 : i32 to vector<1x8x128xi32>
    %55 = arith.cmpi eq, %51, %54 : vector<1x8x128xi32>
    %56 = arith.andi %53, %55 : vector<1x8x128xi1>
    %c0_i32_15 = arith.constant 0 : i32
    %57 = vector.broadcast %c0_i32_15 : i32 to vector<1x8x128xi32>
    %58 = arith.cmpi eq, %50, %57 : vector<1x8x128xi32>
    %c1_i32 = arith.constant 1 : i32
    %59 = vector.broadcast %c1_i32 : i32 to vector<1x8x128xi32>
    %60 = arith.cmpi eq, %51, %59 : vector<1x8x128xi32>
    %61 = arith.andi %58, %60 : vector<1x8x128xi1>
    %cst_16 = arith.constant 0.000000e+00 : f32
    %62 = vector.broadcast %49 : f32 to vector<1x8x128xf32>
    %63 = vector.broadcast %cst_16 : f32 to vector<1x8x128xf32>
    %64 = arith.select %61, %62, %63 : vector<1x8x128xi1>, vector<1x8x128xf32>
    %65 = vector.broadcast %45 : f32 to vector<1x8x128xf32>
    %66 = arith.select %56, %65, %64 : vector<1x8x128xi1>, vector<1x8x128xf32>
    %c0_17 = arith.constant 0 : index
    %c0_18 = arith.constant 0 : index
    %c0_19 = arith.constant 0 : index
    %67 = vector.load %arg3[%c0_17, %c0_18, %c0_19] : memref<1x8x128xf32, #tpu.memory_space<vmem>>, vector<1x8x128xf32>
    tpu.vector_store %arg3[%c0_17, %c0_18, %c0_19], %66 {strides = array<i32>} : memref<1x8x128xf32, #tpu.memory_space<vmem>>, vector<1x8x128xf32>,
    return
  }
  func.func @transform_0(%arg0: i32) -> (i32, i32) {
    %c0_i32 = arith.constant 0 : i32
    %c0_i32_0 = arith.constant 0 : i32
    return %arg0, %c0_i32 : i32, i32
  }
  func.func @transform_1(%arg0: i32) -> (i32, i32) {
    %c0_i32 = arith.constant 0 : i32
    %c0_i32_0 = arith.constant 0 : i32
    return %arg0, %c0_i32 : i32, i32
  }
  func.func @transform_2(%arg0: i32) -> (i32, i32, i32) {
    %c0_i32 = arith.constant 0 : i32
    %c0_i32_0 = arith.constant 0 : i32
    %c0_i32_1 = arith.constant 0 : i32
    return %arg0, %c0_i32, %c0_i32_0 : i32, i32, i32
  }
}

</mosaic_0001>

<bundles_post_ra>
// kernel: tpu_custom_call.1
= control target key start
LH: loop header
LB: loop body
LE: loop exit
PB: predicated region body
PF: predicated region fallthrough
CT: control target
= control target key end

     0   :  { %7 = vsyncpa [#allocation3], 0  ;;  %s555_s0 = inlined_call_operand.vmem [shape: f32[19,7], index: 0, kind: input, shape index: {}]   ;;  %s556_s1 = inlined_call_operand.vmem [shape: s32[19,1], index: 1, kind: input, shape index: {}]   ;;  %s557_s2 = inlined_call_operand.hbm [shape: f32[3,8,128], index: 2, kind: output, shape index: {}]  }
   0x1   :  { %9 = vsyncpa [#allocation3 + $0x1], 0  ;;  %s460_s9 = smov 0   ;;  %s462_s10 = smov 0  }
   0x2   :  { %s464_s11 = smov 0   ;;  %s466_s12 = smov 0  }
   0x3 LB: > { %s481_s13 = sadd.s32 4294967295, %s441_s12   ;;  %s315_s14 = sadd.s32 4294967294, %s441_s12   ;;  %s441_s12 = sphi %s466_s12, %s563_s12   ;;  %s437_s11 = sphi %s464_s11, %s562_s11   ;;  %s433_s10 = sphi %s462_s10, %s561_s10   ;;  %s429_s9 = sphi %s460_s9, %s560_s9  }
   0x4   : > { %s485_s15 = sadd.s32 1, %s441_s12   ;;  %s74_s16 = sadd.s32 1, %s437_s11 }
   0x5   : > { %s71_s17 = ssub.s32 %s441_s12, %s485_s15  ;;  %p84_p0 = scmp.ne.s32.totalorder %s437_s11, %s433_s10 }
   0x6   : > { %p72_p1 = scmp.eq.s32.totalorder %s71_s17, 0  ;;  %p85_p2 = scmp.eq.s32.totalorder %s481_s13, 2 }
   0x7   : > { %p90_p3 = scmp.ne.s32.totalorder %s433_s10, %s429_s9  ;;  %p91_p4 = scmp.eq.s32.totalorder %s315_s14, 2 }
   0x8   : > { %s496_s18 = scalar_select %p72_p1, %s437_s11, %s74_s16  }
   0x9   : > { %p498_p5 = por %p85_p2, %p84_p0  ;;  %p502_p6 = por %p91_p4, %p90_p3 }
   0xa   : > { %p318_p7 = scmp.ge.s32.totalorder %s441_s12, 1  ;;  %p123_p8 = scmp.lt.s32.totalorder %s441_s12, 4 }
   0xc   : > { %p124_p9 = pnand %p318_p7, %p123_p8 }
   0xd   : > { %p148_p10 = scmp.lt.s32.totalorder (!%p124_p9), %s481_s13, 2  ;;  %s322_s29 = sshll.u32 (!%p124_p9), %s481_s13, 3 }
   0xe   : > { %127 = sbr.rel (%p124_p9) target bundleno = 492 (0x1ec), region = 28  ;;  %s145_s30 = sand.u32 (!%p124_p9), 1, %s433_s10  }
   0xf   : > { %s319_s3 = sshll.u32 (!%p124_p9), %s145_s30, 3  ;;  %s239_s6 = scalar_lea.hbm (!%p124_p9), %s557_s2, %s322_s29 }
  0x10   : > { %s147_s7 = scalar_lea.vmem (!%p124_p9), [#allocation2], %s319_s3  ;;  %s243_s16 = sshll.u32 (!%p124_p9), %s239_s6, 4  ;;  %s244_s16 = int_to_ptr.hbm [resolvable:$true] %s243_s16 }
  0x11   : > { %s241_s8 = sshll.u32 (!%p124_p9), %s147_s7, 4  ;;  %s242_s8 = int_to_ptr.vmem [resolvable:$true] %s241_s8 }
  0x13   : > { %v443_v0 = vmov 0   ;;  %s149_s21 = scalar_select %p148_p10, %s481_s13, 2  ;;  %vm158_vm0 = vcmask 56320   ;;  %v170_v9 = vlaneseq  ;;  %v190_v21 = vstv %s322_s29 }
  0x14   : > { %372 = vset.pattern.permute.xlu0 %v443_v0  ;;  %vm197_vm5 = vcmask 7168   ;;  %v444_v30 = vmov 0.0   ;;  %s229_s13 = scalar_lea.sflag [#allocation3], %s145_s30 }
  0x15   : > { %s320_s22 = sshll.u32 %s149_s21, 3  ;;  %v171_v10 = vand.u32 127, %v170_v9  ;;  %v188_v20 = vshrl.u32 %v170_v9, 7  ;;  %s393_s21 = sshra.s32 %s244_s16, 4  ;;  %s394_s21 = int_to_ptr.hbm [resolvable:$true] %s393_s21 }
  0x16   : > { %s151_s25 = scalar_lea.vmem %s555_s0, %s320_s22  ;;  %s155_s28 = scalar_lea.vmem %s556_s1, %s320_s22 }
  0x17   : > { %v156_v1 = vld [vmem:[%s151_s25] sm:$0xff]  ;;  %v191_v22 = vadd.s32 %v190_v21, %v188_v20  ;;  %vm218_vm6 = vcmp.eq.s32.totalorder %v188_v20, 0  ;;  %vm221_vm7 = vcmp.eq.s32.totalorder %v171_v10, 1  ;;  %vm219_vm8 = vcmp.eq.s32.totalorder %v171_v10, 0  ;;  %s395_s22 = scalar_lea.hbm %s394_s21, 8  ;;  %s399_s25 = scalar_lea.hbm %s557_s2, 24 }
  0x18   : > { %v159_v2 = vsel %vm158_vm0, %v156_v1, -inf  ;;  %v157_v3 = vld [vmem:[%s155_s28] sm:$0xff]  ;;  %vm222_vm9 = vmand %vm218_vm6, %vm221_vm7  ;;  %p396_p11 = scmp.ne.s32.totalorder %s394_s21, %s395_s22  ;;  %p400_p0 = scmp.lt.s32.totalorder %s394_s21, %s557_s2 }
  0x19   : > { %160 = vmax.xlane.f32.xlu0 %v159_v2  ;;  %vm192_vm2 = vcmp.ne.s32.totalorder %v157_v3, 4294967196  ;;  %vm193_vm3 = vcmp.lt.s32.totalorder %v191_v22, 19  ;;  %vm220_vm10 = vmand %vm218_vm6, %vm219_vm8  ;;  %p401_p1 = scmp.lt.s32.totalorder %s399_s25, %s395_s22 }
  0x1a   : > { %vm194_vm4 = vmand %vm192_vm2, %vm193_vm3  ;;  %p397_p12 = pnand %p396_p11, %p498_p5 }
  0x1b   : > { %v196_v31 = vsel %vm194_vm4, 1.0, %v444_v30  ;;  %p402_p2 = por %p401_p1, %p400_p0 }
  0x1c   : > { %v208_v32 = vsel %vm197_vm5, %v196_v31, 0.0  ;;  %p398_p13 = pneg %p397_p12 }
  0x1e   : > { %p403_p3 = pnand %p402_p2, %p398_p13 }
  0x2d   : > { %173 = vperm.xlu0 %372, %v157_v3  }
  0x8c   : > { %v161_v4 = vpop.xlane.xlu0 %160 }
  0x8d   : > { %v162_v5 = vsub.f32 %v156_v1, %v161_v4 }
  0x8f   : > { %v163_v6 = vmul.f32 1.442695, %v162_v5 }
  0x91   : > { %373 = vpow2.f32 %v163_v6 }
  0x97   : > { %v374_v7 = vpop.eup %373 }
  0x98   : > { %v165_v8 = vsel %vm158_vm0, %v374_v7, 0.0 }
  0x99   : > { %166 = vadd.xlane.f32.xlu1 %v165_v8 }
  0x9f   : > { %v174_v11 = vpop.permute.xlu0 %173 }
  0xa0   : > { %vm175_vm1 = vcmp.eq.s32.totalorder %v171_v10, %v174_v11 }
  0xa1   : > { %v176_v12 = vsel %vm175_vm1, %v162_v5, 0.0 }
  0xa2   : > { %v177_v13 = vsel %vm158_vm0, %v176_v12, 0.0 }
  0xa3   : > { %178 = vadd.xlane.f32.xlu1 %v177_v13 }
 0x10c   : > { %v167_v14 = vpop.xlane.xlu1 %166 }
 0x10d   : > { %375 = vlog2.f32 %v167_v14 }
 0x113   : > { %v376_v15 = vpop.eup %375 }
 0x114   : > { %v169_v16 = vmul.f32 0.6931472, %v376_v15 }
 0x116   : > { %v179_v17 = vpop.xlane.xlu1 %178 }
 0x117   : > { %v180_v18 = vsub.f32 %v179_v17, %v169_v16 }
 0x119   : > { %v181_v19 = vmul.f32 1.442695, %v180_v18 }
 0x11b   : > { %377 = vpow2.f32 %v181_v19 }
 0x121   : > { %v378_v23 = vpop.eup %377 }
 0x122   : > { %v183_v24 = vsub.f32 1.0, %v378_v23 }
 0x124   : > { %v184_v25 = vmul.f32 %v183_v24, %v183_v24 }
 0x126   : > { %v185_v26 = vsub.f32 0.0, %v184_v25 }
 0x128   : > { %v186_v27 = vmul.f32 %v185_v26, %v180_v18 }
 0x12a   : > { %v195_v28 = vsel %vm194_vm4, %v186_v27, 0.0 }
 0x12b   : > { %v198_v29 = vsel %vm197_vm5, %v195_v28, 0.0 }
 0x12c   : > { %199 = vadd.xlane.f32.xlu2 %v198_v29 }
 0x134   : > { %209 = vadd.xlane.f32.xlu2 %v208_v32 }
 0x19f   : > { %v200_v33 = vpop.xlane.xlu2 %199 }
 0x1a0   : > { %v201_v34 = vrot.slane %v200_v33, 4 }
 0x1a2   : > { %v202_v35 = vadd.f32 %v201_v34, %v200_v33 }
 0x1a4   : > { %v203_v36 = vrot.slane %v202_v35, 2 }
 0x1a6   : > { %v204_v37 = vadd.f32 %v203_v36, %v202_v35 }
 0x1a7   : > { %v210_v38 = vpop.xlane.xlu2 %209 }
 0x1a8   : > { %v211_v39 = vrot.slane %v210_v38, 4  ;;  %v205_v40 = vrot.slane %v204_v37, 1 }
 0x1aa   : > { %v212_v41 = vadd.f32 %v211_v39, %v210_v38  ;;  %v206_v42 = vadd.f32 %v205_v40, %v204_v37 }
 0x1ac   : > { %v213_v43 = vrot.slane %v212_v41, 2  ;;  %327 = vpush %v206_v42 }
 0x1ae   : > { %v214_v44 = vadd.f32 %v213_v43, %v212_v41 }
 0x1b0   : > { %v215_v45 = vrot.slane %v214_v44, 1 }
 0x1b2   : > { %v216_v46 = vadd.f32 %v215_v45, %v214_v44 }
 0x1b4   : > { %329 = vpush %v216_v46 }
 0x1dd   : > { %s328_s14 = spop %327 }
 0x1de   : > { %v225_v48 = vstv %s328_s14 }
 0x1e5   : > { %s330_s17 = spop %329 }
 0x1e6   : > { %v223_v47 = vstv %s330_s17 }
 0x1e7   : > { %v224_v49 = vsel %vm222_vm9, %v223_v47, 0.0 }
 0x1e8   : > { %v226_v50 = vsel %vm220_vm10, %v225_v48, %v224_v49 }
 0x1e9   : > { %227 = vst [vmem:[%s147_s7] sm:$0xff] %v226_v50 }
 0x1ea   : > { %406 = shalt.err (!%p403_p3)
}
 0x1eb   : > { %331 = dma.vmem_to_hbm [thread:$0]  (%p498_p5), %s242_s8, 128, %s244_s16, %s229_s13  }
 0x1ec PF: > { %p337_p4 = scmp.ge.s32.totalorder %s441_s12, 2  ;;  %s255_s28 = sand.u32 1, %s429_s9  }
 0x1ed   : > { %s256_s29 = scalar_lea.sflag [#allocation3], %s255_s28 }
 0x1ee   : > { %p334_p7 = pnand %p337_p4, %p502_p6 }
 0x1f0   : > { %p335_p8 = pneg %p334_p7 }
 0x1f2   : > { %424 = dma.done.wait (%p335_p8), %s256_s29, 128  }
 0x1f3   : > { %426 = vsyncadd (%p335_p8), %s256_s29, 4294967168  ;;  %p12_p9 = scmp.ge.s32.totalorder %s485_s15, 5   ;;  %s560_s9 = smov %s433_s10 }
 0x1f4   : > { %s561_s10 = smov %s437_s11  ;;  %s562_s11 = smov %s496_s18 }
 0x1f5   : > { %s563_s12 = smov %s485_s15  ;;  %14 = sbr.rel (!%p12_p9) target bundleno = 3 (0x3), region = 66 }
 0x1fa   :  { %262 = vsyncpa [#allocation3], 1 }
 0x1fb   :  { %264 = vsyncpa [#allocation3 + $0x1], 1 }

</bundles_post_ra>
